<compile_context>
chip_gen: v7x
topology: tpu7x:2x2x1
jax: 0.10.0
libtpu: 0.0.40
codegen_flags: <defaults>
</compile_context>

<pallas_src>
import functools

import jax
import jax.numpy as jnp
from jax import lax
from jax.experimental import pallas as pl
from jax.experimental.pallas import tpu as pltpu


def _downsampler_kernel(t_ref, wk_ref, bc_ref, w1_ref, b1_ref, o_ref, *, c):
    """Fused DownsamplerBlock for one batch image.

    t_ref : (1, 5*C, Wo)  stride-3 conv taps, row k*C+ci = x_pad[ci, 3*w + k]
    wk_ref: (C, 5*C)      (1,5)-conv weights, column k*C+ci
    bc_ref: (C, 1)        conv bias
    w1_ref: (2, C, C)     1x1-conv weights split into [conv-half, pool-half]
    b1_ref: (C, 1)        1x1-conv bias
    o_ref : (1, C, Wo)    output image, Wo = W // 3, W on lanes
    """
    hi = lax.Precision.HIGHEST
    t = t_ref[0]                                           # (5C, Wo)

    # Conv branch: Conv2d(C, C, (1,5), stride=3, padding=(0,1)) as ONE dot.
    conv = jnp.dot(wk_ref[...], t,
                   preferred_element_type=jnp.float32, precision=hi) + bc_ref[...]

    # Pool branch: MaxPool2d((1,3), stride=(1,3)).  Taps 1..3 are exactly the
    # three pool phases of the UNPADDED input (they never touch the pad zeros).
    pool = jnp.maximum(jnp.maximum(t[c:2 * c], t[2 * c:3 * c]), t[3 * c:4 * c])

    # 1x1 conv over the implicit channel concat [conv ; pool]: the 2C-wide
    # contraction is split into its two C-wide halves (no concat materialized).
    y = (jnp.dot(w1_ref[0], conv, preferred_element_type=jnp.float32, precision=hi)
         + jnp.dot(w1_ref[1], pool, preferred_element_type=jnp.float32, precision=hi)
         + b1_ref[...])
    o_ref[0] = y                                           # lane-dense (C, Wo) store


def downsampler_block(x, params):
    """DownsamplerBlock.forward for NCHW input (H must be 1). One pallas_call."""
    B, C, H, W = x.shape
    if H != 1:
        raise ValueError("DownsamplerBlock's channel concat requires H == 1")
    if W < 3:
        raise ValueError("W must be >= 3")
    Wo = W // 3          # both branches floor to W // 3 (PyTorch floor mode)

    # ---- one-time linear relayout (replaces the old in-kernel SEL matmul) ----
    # Padded coordinates: x_pad = [0, x, 0...]; conv tap k at output w reads
    # x_pad[3*w + k].  Splitting x_pad by (index mod 3) gives three phase
    # planes of length Wo+1; the five taps are static slices of those planes.
    x2 = x[:, :, 0, :].astype(jnp.float32)                    # (B, C, W)
    pad_r = 3 * Wo + 2 - W                                    # in {0, 1, 2}
    xp = jnp.pad(x2, ((0, 0), (0, 0), (1, pad_r)))            # (B, C, 3*Wo+3)
    q = xp.reshape(B, C, Wo + 1, 3).transpose(0, 3, 1, 2)     # (B, 3, C, Wo+1)
    taps = jnp.concatenate([q[:, :, :, :Wo],                  # taps 0, 1, 2
                            q[:, :2, :, 1:]], axis=1)         # taps 3, 4
    taps = taps.reshape(B, 5 * C, Wo)                         # row k*C + ci

    # Tiny one-time weight repacks (match the tap row ordering above).
    wc = params["conv_w"].astype(jnp.float32)                 # (C, C, 1, 5)
    wk = jnp.concatenate([wc[:, :, 0, k] for k in range(5)], axis=1)   # (C, 5C)
    bc = params["conv_b"].astype(jnp.float32).reshape(C, 1)
    w1f = params["conv1_w"].astype(jnp.float32).reshape(C, 2 * C)
    w1 = jnp.stack([w1f[:, :C], w1f[:, C:]], axis=0)          # (2, C, C)
    b1 = params["conv1_b"].astype(jnp.float32).reshape(C, 1)

    out = pl.pallas_call(
        functools.partial(_downsampler_kernel, c=C),
        out_shape=jax.ShapeDtypeStruct((B, C, Wo), jnp.float32),
        grid=(B,),
        in_specs=[
            pl.BlockSpec((1, 5 * C, Wo), lambda b: (b, 0, 0)),  # one image / step
            pl.BlockSpec((C, 5 * C), lambda b: (0, 0)),         # weights resident
            pl.BlockSpec((C, 1), lambda b: (0, 0)),
            pl.BlockSpec((2, C, C), lambda b: (0, 0, 0)),
            pl.BlockSpec((C, 1), lambda b: (0, 0)),
        ],
        out_specs=pl.BlockSpec((1, C, Wo), lambda b: (b, 0, 0)),
        compiler_params=pltpu.CompilerParams(
            dimension_semantics=("parallel",),   # images independent -> both v7x TCs
        ),
    )(taps, wk, bc, w1, b1)
    return out[:, :, None, :]                                 # back to NCHW


def downsampler_block_reference(x, params):
    """Pure-XLA reference (same math as the PyTorch module, eval mode)."""
    dn = ("NCHW", "OIHW", "NCHW")
    hi = lax.Precision.HIGHEST
    conv = lax.conv_general_dilated(
        x, params["conv_w"], window_strides=(3, 3), padding=((0, 0), (1, 1)),
        dimension_numbers=dn, precision=hi) + params["conv_b"][None, :, None, None]
    pool = lax.reduce_window(x, -jnp.inf, lax.max,
                             window_dimensions=(1, 1, 1, 3),
                             window_strides=(1, 1, 1, 3), padding="VALID")
    cat = jnp.concatenate([conv, pool], axis=1)
    out = lax.conv_general_dilated(
        cat, params["conv1_w"], window_strides=(1, 1), padding=((0, 0), (0, 0)),
        dimension_numbers=dn, precision=hi) + params["conv1_b"][None, :, None, None]
    return out


if __name__ == "__main__":
    # H must be 1 (the module's concat requires it); W = 384 keeps the input
    # tiny while making the output width 128 -> lane-dense output tiles.
    B, C, H, W = 2, 4, 1, 384

    key = jax.random.PRNGKey(0)
    kx, k1, k2, k3, k4 = jax.random.split(key, 5)
    x = jax.random.normal(kx, (B, C, H, W), jnp.float32)
    params = {
        "conv_w": 0.1 * jax.random.normal(k1, (C, C, 1, 5), jnp.float32),
        "conv_b": 0.1 * jax.random.normal(k2, (C,), jnp.float32),
        "conv1_w": 0.1 * jax.random.normal(k3, (C, 2 * C, 1, 1), jnp.float32),
        "conv1_b": 0.1 * jax.random.normal(k4, (C,), jnp.float32),
    }

    fwd = jax.jit(lambda inp: downsampler_block(inp, params))
    out = fwd(x)
    jax.block_until_ready(out)
    assert out.shape == (B, C, 1, W // 3) and out.dtype == jnp.float32

    ref = downsampler_block_reference(x, params)
    err = float(jnp.max(jnp.abs(out - ref)))
    assert err < 1e-4, f"mismatch vs reference: max abs err = {err}"
    print("KERNEL_OK")
</pallas_src>

<mosaic_0001>
module attributes {stable_mosaic.version = 11 : i64} {
  func.func @_downsampler_kernel(%arg0: i32, %arg1: memref<1x20x128xf32, #tpu.memory_space<vmem>>, %arg2: memref<4x20xf32, #tpu.memory_space<vmem>>, %arg3: memref<4x1xf32, #tpu.memory_space<vmem>>, %arg4: memref<2x4x4xf32, #tpu.memory_space<vmem>>, %arg5: memref<4x1xf32, #tpu.memory_space<vmem>>, %arg6: memref<1x4x128xf32, #tpu.memory_space<vmem>>) attributes {dimension_semantics = [#tpu.dimension_semantics<parallel>], iteration_bounds = array<i64: 2>, scalar_prefetch = 0 : i64, scratch_operands = 0 : i64, tpu.core_type = #tpu.core_type<tc>, window_params = [{transform_indices = @transform_0, window_bounds = array<i64: 1, 20, 128>}, {pipeline_mode = #tpu.pipeline_mode<synchronous>, transform_indices = @transform_1, window_bounds = array<i64: 4, 20>}, {pipeline_mode = #tpu.pipeline_mode<synchronous>, transform_indices = @transform_2, window_bounds = array<i64: 4, 1>}, {pipeline_mode = #tpu.pipeline_mode<synchronous>, transform_indices = @transform_3, window_bounds = array<i64: 2, 4, 4>}, {pipeline_mode = #tpu.pipeline_mode<synchronous>, transform_indices = @transform_4, window_bounds = array<i64: 4, 1>}, {transform_indices = @transform_5, window_bounds = array<i64: 1, 4, 128>}]} {
    %c0 = arith.constant 0 : index
    %c0_0 = arith.constant 0 : index
    %c0_1 = arith.constant 0 : index
    %0 = vector.load %arg1[%c0, %c0_0, %c0_1] : memref<1x20x128xf32, #tpu.memory_space<vmem>>, vector<1x20x128xf32>
    %1 = vector.shape_cast %0 : vector<1x20x128xf32> to vector<20x128xf32>
    %c0_2 = arith.constant 0 : index
    %c0_3 = arith.constant 0 : index
    %2 = vector.load %arg2[%c0_2, %c0_3] : memref<4x20xf32, #tpu.memory_space<vmem>>, vector<4x20xf32>
    %cst = arith.constant dense<0.000000e+00> : vector<4x128xf32>
    %3 = tpu.matmul %2, %1, %cst {dimension_numbers = #tpu.dot_dimension_numbers<[1], [0], [0], [1], [0, 0, 1, 1], [], []>, precision = #tpu.contract_precision<fp32>} : vector<4x20xf32>, vector<20x128xf32>, vector<4x128xf32> -> vector<4x128xf32>
    %c0_4 = arith.constant 0 : index
    %c0_5 = arith.constant 0 : index
    %4 = vector.load %arg3[%c0_4, %c0_5] : memref<4x1xf32, #tpu.memory_space<vmem>>, vector<4x1xf32>
    %5 = vector.broadcast %4 : vector<4x1xf32> to vector<4x128xf32>
    %6 = arith.addf %3, %5 : vector<4x128xf32>
    %7 = vector.extract_strided_slice %1 {offsets = [4, 0], sizes = [4, 128], strides = [1, 1]} : vector<20x128xf32> to vector<4x128xf32>
    %8 = vector.extract_strided_slice %1 {offsets = [8, 0], sizes = [4, 128], strides = [1, 1]} : vector<20x128xf32> to vector<4x128xf32>
    %9 = arith.maximumf %7, %8 : vector<4x128xf32>
    %10 = vector.extract_strided_slice %1 {offsets = [12, 0], sizes = [4, 128], strides = [1, 1]} : vector<20x128xf32> to vector<4x128xf32>
    %11 = arith.maximumf %9, %10 : vector<4x128xf32>
    %c0_6 = arith.constant 0 : index
    %c0_7 = arith.constant 0 : index
    %c0_8 = arith.constant 0 : index
    %12 = vector.load %arg4[%c0_6, %c0_7, %c0_8] : memref<2x4x4xf32, #tpu.memory_space<vmem>>, vector<1x4x4xf32>
    %13 = vector.shape_cast %12 : vector<1x4x4xf32> to vector<4x4xf32>
    %cst_9 = arith.constant dense<0.000000e+00> : vector<4x128xf32>
    %14 = tpu.matmul %13, %6, %cst_9 {dimension_numbers = #tpu.dot_dimension_numbers<[1], [0], [0], [1], [0, 0, 1, 1], [], []>, precision = #tpu.contract_precision<fp32>} : vector<4x4xf32>, vector<4x128xf32>, vector<4x128xf32> -> vector<4x128xf32>
    %c1 = arith.constant 1 : index
    %c0_10 = arith.constant 0 : index
    %c0_11 = arith.constant 0 : index
    %15 = vector.load %arg4[%c1, %c0_10, %c0_11] : memref<2x4x4xf32, #tpu.memory_space<vmem>>, vector<1x4x4xf32>
    %16 = vector.shape_cast %15 : vector<1x4x4xf32> to vector<4x4xf32>
    %cst_12 = arith.constant dense<0.000000e+00> : vector<4x128xf32>
    %17 = tpu.matmul %16, %11, %cst_12 {dimension_numbers = #tpu.dot_dimension_numbers<[1], [0], [0], [1], [0, 0, 1, 1], [], []>, precision = #tpu.contract_precision<fp32>} : vector<4x4xf32>, vector<4x128xf32>, vector<4x128xf32> -> vector<4x128xf32>
    %18 = arith.addf %14, %17 : vector<4x128xf32>
    %c0_13 = arith.constant 0 : index
    %c0_14 = arith.constant 0 : index
    %19 = vector.load %arg5[%c0_13, %c0_14] : memref<4x1xf32, #tpu.memory_space<vmem>>, vector<4x1xf32>
    %20 = vector.broadcast %19 : vector<4x1xf32> to vector<4x128xf32>
    %21 = arith.addf %18, %20 : vector<4x128xf32>
    %c0_15 = arith.constant 0 : index
    %c0_16 = arith.constant 0 : index
    %c0_17 = arith.constant 0 : index
    %22 = vector.load %arg6[%c0_15, %c0_16, %c0_17] : memref<1x4x128xf32, #tpu.memory_space<vmem>>, vector<1x4x128xf32>
    %23 = vector.shape_cast %22 : vector<1x4x128xf32> to vector<4x128xf32>
    %24 = vector.shape_cast %21 : vector<4x128xf32> to vector<1x4x128xf32>
    tpu.vector_store %arg6[%c0_15, %c0_16, %c0_17], %24 {strides = array<i32>} : memref<1x4x128xf32, #tpu.memory_space<vmem>>, vector<1x4x128xf32>,
    return
  }
  func.func @transform_0(%arg0: i32) -> (i32, i32, i32) {
    %c0_i32 = arith.constant 0 : i32
    %c0_i32_0 = arith.constant 0 : i32
    %c0_i32_1 = arith.constant 0 : i32
    return %arg0, %c0_i32, %c0_i32_0 : i32, i32, i32
  }
  func.func @transform_1(%arg0: i32) -> (i32, i32) {
    %c0_i32 = arith.constant 0 : i32
    %c0_i32_0 = arith.constant 0 : i32
    %c0_i32_1 = arith.constant 0 : i32
    return %c0_i32, %c0_i32_0 : i32, i32
  }
  func.func @transform_2(%arg0: i32) -> (i32, i32) {
    %c0_i32 = arith.constant 0 : i32
    %c0_i32_0 = arith.constant 0 : i32
    %c0_i32_1 = arith.constant 0 : i32
    return %c0_i32, %c0_i32_0 : i32, i32
  }
  func.func @transform_3(%arg0: i32) -> (i32, i32, i32) {
    %c0_i32 = arith.constant 0 : i32
    %c0_i32_0 = arith.constant 0 : i32
    %c0_i32_1 = arith.constant 0 : i32
    %c0_i32_2 = arith.constant 0 : i32
    return %c0_i32, %c0_i32_0, %c0_i32_1 : i32, i32, i32
  }
  func.func @transform_4(%arg0: i32) -> (i32, i32) {
    %c0_i32 = arith.constant 0 : i32
    %c0_i32_0 = arith.constant 0 : i32
    %c0_i32_1 = arith.constant 0 : i32
    return %c0_i32, %c0_i32_0 : i32, i32
  }
  func.func @transform_5(%arg0: i32) -> (i32, i32, i32) {
    %c0_i32 = arith.constant 0 : i32
    %c0_i32_0 = arith.constant 0 : i32
    %c0_i32_1 = arith.constant 0 : i32
    return %arg0, %c0_i32, %c0_i32_0 : i32, i32, i32
  }
}

</mosaic_0001>

<bundles_post_ra>
// kernel: _lambda_.1
= control target key start
LH: loop header
LB: loop body
LE: loop exit
PB: predicated region body
PF: predicated region fallthrough
CT: control target
= control target key end

     0   :  { %10 = vsyncpa [#allocation3], 0  ;;  %s2290_s0 = inlined_call_operand.vmem [shape: f32[2,20,128], index: 0, kind: input, shape index: {}]   ;;  %s2291_s1 = inlined_call_operand.vmem [shape: f32[4,20], index: 1, kind: input, shape index: {}]   ;;  %s2292_s2 = inlined_call_operand.vmem [shape: f32[4,1], index: 2, kind: input, shape index: {}]   ;;  %s2293_s3 = inlined_call_operand.vmem [shape: f32[2,4,4], index: 3, kind: input, shape index: {}]   ;;  %s2294_s4 = inlined_call_operand.vmem [shape: f32[4,1], index: 4, kind: input, shape index: {}]   ;;  %s2295_s5 = inlined_call_operand.hbm [shape: f32[2,4,128], index: 5, kind: output, shape index: {}]  }
   0x1   :  { %12 = vsyncpa [#allocation3 + $0x1], 0  ;;  %s2054_s18 = smov 0   ;;  %s2056_s19 = smov 0  }
   0x2   :  { %s2058_s20 = smov 0   ;;  %s2060_s21 = smov 0  }
   0x3 LB: > { %s2075_s22 = sadd.s32 4294967295, %s2017_s21   ;;  %s1708_s23 = sadd.s32 4294967294, %s2017_s21   ;;  %s2017_s21 = sphi %s2060_s21, %s2301_s21   ;;  %s2013_s20 = sphi %s2058_s20, %s2300_s20   ;;  %s2009_s19 = sphi %s2056_s19, %s2299_s19   ;;  %s2005_s18 = sphi %s2054_s18, %s2298_s18  }
   0x4   : > { %s2079_s24 = sadd.s32 1, %s2017_s21   ;;  %s135_s25 = sadd.s32 1, %s2013_s20 }
   0x5   : > { %s132_s26 = ssub.s32 %s2017_s21, %s2079_s24  ;;  %p145_p0 = scmp.ne.s32.totalorder %s2013_s20, %s2009_s19 }
   0x6   : > { %p133_p1 = scmp.eq.s32.totalorder %s132_s26, 0  ;;  %p146_p2 = scmp.eq.s32.totalorder %s2075_s22, 1 }
   0x7   : > { %p151_p3 = scmp.ne.s32.totalorder %s2009_s19, %s2005_s18  ;;  %p152_p4 = scmp.eq.s32.totalorder %s1708_s23, 1 }
   0x8   : > { %s2090_s27 = scalar_select %p133_p1, %s2013_s20, %s135_s25  }
   0x9   : > { %p2092_p5 = por %p146_p2, %p145_p0  ;;  %p2096_p6 = por %p152_p4, %p151_p3 }
   0xa   : > { %p1711_p7 = scmp.ge.s32.totalorder %s2017_s21, 1  ;;  %p190_p8 = scmp.lt.s32.totalorder %s2017_s21, 3 }
   0xc   : > { %p191_p9 = pnand %p1711_p7, %p190_p8 }
   0xd   : > { %p218_p10 = scmp.lt.s32.totalorder (!%p191_p9), %s2075_s22, 1  ;;  %v2019_v0 = vmov (!%p191_p9), 0.0|0.0   ;;  %vm2020_vm0 = vmmov (!%p191_p9), 0   ;;  %v2021_v1 = vmov (!%p191_p9), 0.0   ;;  %v226_v2 = vld [vmem:[%s2291_s1] sm:$0xf] (!%p191_p9) }
   0xe   : > { %194 = sbr.rel (%p191_p9) target bundleno = 544 (0x220), region = 40  ;;  %1881 = vmatprep.subr.bf16.mxu0 (!%p191_p9), %v2019_v0  ;;  %1773 = vmatprep.mubr.msk.f32.mxu0 (!%p191_p9), %vm2020_vm0, %v2021_v1  ;;  %vm233_vm1 = vcmask (!%p191_p9), 162816   ;;  %v227_v3 = vld [vmem:[%s2292_s2] sm:$0xf] (!%p191_p9)  ;;  %v2022_v5 = vmov (!%p191_p9), 0   ;;  %vm723_vm2 = vcmask (!%p191_p9), 31744  }
   0xf   : > { %v235_v4 = vsel (!%p191_p9), %vm233_vm1, %v226_v2, 0  ;;  %1954 = vset.pattern.permute.xlu0 (!%p191_p9), %v2022_v5  ;;  %1821 = vmatprep.subr.mxu1 (!%p191_p9), %v2021_v1  ;;  %v1714_v7 = vld [vmem:[%s2293_s3 + $0x4] sm:$0xf] (!%p191_p9)  ;;  %v1627_v8 = vld [vmem:[%s2294_s4] sm:$0xf] (!%p191_p9)  ;;  %vm237_vm3 = vcmask (!%p191_p9), 1043456  }
  0x10   : > { %v2114_v6 = vand.u32 (!%p191_p9), 4294901760, %v235_v4  ;;  %230 = vperm.xlu0 (!%p191_p9), %1954, %v227_v3   ;;  %1823 = vmatprep.mubr.msk.f32.mxu1 (!%p191_p9), %vm2020_vm0, %v2021_v1  ;;  %v725_v9 = vsel (!%p191_p9), %vm723_vm2, %v1714_v7, 0  ;;  %v718_v63 = vld [vmem:[%s2293_s3] sm:$0xf] (!%p191_p9)  ;;  %s215_s26 = sand.u32 (!%p191_p9), 1, %s2009_s19   ;;  %s1716_s6 = sshll.u32 (!%p191_p9), %s2075_s22, 6 }
  0x11   : > { %v2128_v11 = vand.u32 (!%p191_p9), 4294901760, %v725_v9  ;;  %v1176_v2 = vsel (!%p191_p9), %vm723_vm2, %v718_v63, 0  ;;  %s1712_s30 = sshll.u32 (!%p191_p9), %s215_s26, 2  ;;  %s2248_s11 = scalar_lea.hbm (!%p191_p9), %s2295_s5, %s1716_s6 }
  0x12   : > { %v2126_v10 = vsub.f32 (!%p191_p9), %v235_v4, %v2114_v6  ;;  %v1247_v5 = vand.u32 (!%p191_p9), 4294901760, %v1176_v2  ;;  %s217_s7 = scalar_lea.vmem (!%p191_p9), [#allocation2], %s1712_s30 }
  0x13   : > { %v2135_v16 = vsub.f32 (!%p191_p9), %v725_v9, %v2128_v11  ;;  %s1649_s8 = sshll.u32 (!%p191_p9), %s217_s7, 4  ;;  %s2250_s8 = int_to_ptr.vmem [resolvable:$true] %s1649_s8 }
  0x14   : > { %v311_v15 = vand.u32 (!%p191_p9), 4294901760, %v2126_v10  ;;  %1630 = vperm.xlu0 (!%p191_p9), %1954, %v1627_v8   ;;  %v1248_v9 = vsub.f32 (!%p191_p9), %v1176_v2, %v1247_v5  ;;  %s1955_s13 = scalar_lea.vmem (!%p191_p9), %s2250_s8, 64 }
  0x15   : > { %s219_s9 = scalar_select %p218_p10, %s2075_s22, 1  ;;  %v797_v23 = vand.u32 4294901760, %v2135_v16 }
  0x16   : > { %v312_v22 = vsub.f32 %v2126_v10, %v311_v15  ;;  %p1956_p11 = scmp.ne.s32.totalorder %s2250_s8, %s1955_s13  ;;  %s2023_s22 = smov [#allocation2]  }
  0x17   : > { %s1910_s12 = smul.u32 24, %s219_s9  ;;  %v798_v29 = vsub.f32 %v2135_v16, %v797_v23  ;;  %s1959_s14 = sshll.u32 %s2023_s22, 4  ;;  %s1960_s14 = int_to_ptr.vmem [resolvable:$false] %s1959_s14 }
  0x18   : > { %v313_v33 = vand.u32 4294901760, %v312_v22  ;;  %p1957_p12 = pnand %p1956_p11, %p2092_p5  ;;  %s1961_s15 = scalar_lea.vmem %s1960_s14, 128 }
  0x19   : > { %s222_s17 = scalar_lea.vmem %s2290_s0, %s1910_s12  ;;  %v799_v38 = vand.u32 4294901760, %v798_v29  ;;  %s1636_s12 = scalar_lea.sflag [#allocation3], %s215_s26 }
  0x1a   : > { %v223_v12 = vld [vmem:[%s222_s17] sm:$0xff]  ;;  %v224_v13 = vld [vmem:[%s222_s17 + $0x8] sm:$0xff]  ;;  %v225_v14 = vld [vmem:[%s222_s17 + $0x10] sm:$0xf]  ;;  %p1958_p13 = pneg %p1957_p12  ;;  %p1962_p0 = scmp.lt.s32.totalorder %s2250_s8, %s1960_s14 }
  0x1b   : > { %v242_v17 = vand.u32 4294901760, %v223_v12  ;;  %v245_v18 = vand.u32 4294901760, %v224_v13  ;;  %v714_v19 = vrot.slane %v224_v13, 4  ;;  %v239_v20 = vsel %vm237_vm3, %v225_v14, 0  ;;  %p1963_p1 = scmp.lt.s32.totalorder %s1961_s15, %s1955_s13 }
  0x1c   : > { %v2138_v21 = vand.u32 4294901760, %v239_v20 }
  0x1d   : > { %v2144_v24 = vpack.c.bf16 %v245_v18, %v242_v17  ;;  %v2146_v25 = vsub.f32 %v223_v12, %v242_v17  ;;  %v2148_v26 = vsub.f32 %v224_v13, %v245_v18  ;;  %v716_v27 = vmax.f32 %v223_v12, %v714_v19  ;;  %p1964_p2 = por %p1963_p1, %p1962_p0 }
  0x1e   : > { %v2151_v28 = vsub.f32 %v239_v20, %v2138_v21 }
  0x1f   : > { %1883 = vmatpush3.bf16.msra.mxu0 %v2144_v24  ;;  %v322_v30 = vand.u32 4294901760, %v2146_v25  ;;  %v329_v31 = vand.u32 4294901760, %v2148_v26  ;;  %v717_v32 = vmax.f32 %v716_v27, %v224_v13  ;;  %v1888_v48 = vpack.c.bf16 %v2148_v26, %v2146_v25  ;;  %p1965_p3 = pnand %p1964_p2, %p1958_p13 }
  0x20   : > { %1771 = vmatprep.subr.mxu0 %v2021_v1  ;;  %v336_v34 = vand.u32 4294901760, %v2151_v28 }
  0x21   : > { %v323_v35 = vsub.f32 %v2146_v25, %v322_v30  ;;  %v330_v36 = vsub.f32 %v2148_v26, %v329_v31  ;;  %v722_v37 = vrot.slane %v717_v32, 4  ;;  %v1894_v51 = vpack.c.bf16 %v329_v31, %v322_v30 }
  0x22   : > { %v337_v41 = vsub.f32 %v2151_v28, %v336_v34 }
  0x23   : > { %1772 = vmatpush3.msra.mxu0 %v2138_v21  ;;  %v324_v39 = vand.u32 4294901760, %v323_v35  ;;  %v331_v40 = vand.u32 4294901760, %v330_v36  ;;  %v727_v42 = vsel %vm237_vm3, %v722_v37, 0 }
  0x24   : > { %1774 = vmatmul.mubr.f32.vlgmr.msra.gmra.mrb[0].mxu0 %v313_v33  ;;  %1884 = vmatprep.subr.bf16.mxu0 %v2019_v0  ;;  %v730_v43 = vand.u32 4294901760, %v727_v42  ;;  %v338_v46 = vand.u32 4294901760, %v337_v41 }
  0x25   : > { %v1885_v44 = vpack.c.bf16 %v331_v40, %v324_v39  ;;  %1782 = vmatprep.mubr.msk.f32.mxu0 %vm2020_vm0, %v2021_v1 }
  0x26   : > { %1822 = vmatpush3.msra.mxu1 %v730_v43  ;;  %v807_v45 = vsub.f32 %v727_v42, %v730_v43 }
  0x27   : > { %1886 = vmatpush3.bf16.msra.mxu0 %v1885_v44  ;;  %1824 = vmatmul.mubr.f32.vlgmr.msra.gmra.mrb[0].mxu1 %v799_v38 }
  0x28   : > { %1780 = vmatprep.subr.mxu0 %v2021_v1  ;;  %1826 = vmatprep.subr.mxu1 %v2021_v1  ;;  %v808_v47 = vand.u32 4294901760, %v807_v45 }
  0x29   : > { %1828 = vmatprep.mubr.msk.f32.mxu1 %vm2020_vm0, %v2021_v1 }
  0x2a   : > { %v809_v49 = vsub.f32 %v807_v45, %v808_v47 }
  0x2b   : > { %1781 = vmatpush3.msra.mxu0 %v338_v46 }
  0x2c   : > { %1783 = vmatmul.mubr.f32.vlgmr.msra.gmra.mrb[0].mxu0 %v2114_v6  ;;  %1887 = vmatprep.subr.bf16.mxu0 %v2019_v0  ;;  %v810_v50 = vand.u32 4294901760, %v809_v49 }
  0x2d   : > { %1889 = vmatpush3.bf16.msra.mxu0 %v1888_v48  ;;  %1791 = vmatprep.mubr.msk.f32.mxu0 %vm2020_vm0, %v2021_v1 }
  0x2e   : > { %1789 = vmatprep.subr.mxu0 %v2021_v1  ;;  %1827 = vmatpush3.msra.mxu1 %v810_v50 }
  0x2f   : > { %1829 = vmatmul.mubr.f32.vlgmr.msra.gmra.mrb[2].mxu1 %v2128_v11  ;;  %1831 = vmatprep.subr.mxu1 %v2021_v1 }
  0x30   : > { %1832 = vmatpush3.msra.mxu1 %v807_v45  ;;  %1833 = vmatprep.mubr.msk.f32.mxu1 %vm2020_vm0, %v2021_v1 }
  0x31   : > { %1790 = vmatpush3.msra.mxu0 %v2151_v28  ;;  %1836 = vmatprep.subr.mxu1 %v2021_v1 }
  0x32   : > { %1890 = vmatprep.subr.bf16.mxu0 %v2019_v0 }
  0x33   : > { %1834 = vmatmul.mubr.f32.vlgmr.msra.gmra.mrb[4].mxu1 %v2135_v16 }
  0x34   : > { %1792 = vmatmul.mubr.f32.vlgmr.msra.gmra.mrb[0].mxu0 %v2126_v10  ;;  %1837 = vmatpush3.msra.mxu1 %v730_v43  ;;  %v1249_v10 = vand.u32 4294901760, %v1248_v9 }
  0x35   : > { %1892 = vmatpush3.bf16.msra.mxu0 %v2144_v24  ;;  %1800 = vmatprep.mubr.msk.f32.mxu0 %vm2020_vm0, %v2021_v1 }
  0x36   : > { %1798 = vmatprep.subr.mxu0 %v2021_v1  ;;  %1838 = vmatprep.mubr.msk.f32.mxu1 %vm2020_vm0, %v2021_v1 }
  0x37   : > { %1839 = vmatmul.mubr.f32.vlgmr.msra.gmra.mrb[6].mxu1 %v797_v23  ;;  %1841 = vmatprep.subr.mxu1 %v2021_v1 }
  0x38   : > { %1842 = vmatpush3.msra.mxu1 %v808_v47  ;;  %1843 = vmatprep.mubr.msk.f32.mxu1 %vm2020_vm0, %v2021_v1 }
  0x39   : > { %1799 = vmatpush3.msra.mxu0 %v2138_v21  ;;  %1846 = vmatprep.subr.mxu1 %v2021_v1 }
  0x3a   : > { %1893 = vmatprep.subr.bf16.mxu0 %v2019_v0 }
  0x3b   : > { %1844 = vmatmul.mubr.f32.vlgmr.msra.gmra.mrb[8].mxu1 %v2128_v11 }
  0x3c   : > { %1801 = vmatmul.mubr.f32.vlgmr.msra.gmra.mrb[0].mxu0 %v311_v15  ;;  %1847 = vmatpush3.msra.mxu1 %v730_v43 }
  0x3d   : > { %1895 = vmatpush3.bf16.msra.mxu0 %v1894_v51  ;;  %1809 = vmatprep.mubr.msk.f32.mxu0 %vm2020_vm0, %v2021_v1 }
  0x3e   : > { %1807 = vmatprep.subr.mxu0 %v2021_v1  ;;  %1848 = vmatprep.mubr.msk.f32.mxu1 %vm2020_vm0, %v2021_v1 }
  0x3f   : > { %1849 = vmatmul.mubr.f32.vlgmr.msra.gmra.mrb[10].mxu1 %v2128_v11  ;;  %1851 = vmatprep.subr.mxu1 %v2021_v1  ;;  %v1250_v11 = vsub.f32 %v1248_v9, %v1249_v10 }
  0x40   : > { %1853 = vmatprep.mubr.msk.f32.mxu1 %vm2020_vm0, %v2021_v1 }
  0x41   : > { %1808 = vmatpush3.msra.mxu0 %v336_v34  ;;  %v1251_v17 = vand.u32 4294901760, %v1250_v11 }
  0x42   : > { %1896 = vmatprep.subr.bf16.mxu0 %v2019_v0 }
  0x44   : > { %1810 = vmatmul.mubr.f32.vlgmr.msra.gmra.mrb[0].mxu0 %v2114_v6 }
  0x45   : > { %1898 = vmatpush3.bf16.msra.mxu0 %v2144_v24  ;;  %1818 = vmatprep.mubr.msk.f32.mxu0 %vm2020_vm0, %v2021_v1 }
  0x46   : > { %1816 = vmatprep.subr.mxu0 %v2021_v1 }
  0x49   : > { %1817 = vmatpush3.msra.mxu0 %v2138_v21 }
  0x4a   : > { %1871 = vmatprep.subr.mxu0 %v2021_v1 }
  0x4c   : > { %1819 = vmatmul.mubr.f32.vlgmr.msra.gmra.mrb[0].mxu0 %v2114_v6 }
  0x4d   : > { %1873 = vmatprep.mubr.msk.f32.mxu0 %vm2020_vm0, %v2021_v1 }
  0x8f   : > { %v231_v12 = vpop.permute.xlu0 %230 }
  0x93   : > { %v1631_v40 = vpop.permute.xlu0 %1630 }
  0xfa   : > { %v801_v52 = vpop.f32.mrb[0].mxu1 }
  0xfb   : > { %v1825_v53 = vpop.f32.mrb[1].mxu1 }
 0x102   : > { %v877_v54 = vpop.f32.mrb[2].mxu1 }
 0x103   : > { %v878_v55 = vadd.f32 %v877_v54, %v801_v52  ;;  %v1830_v56 = vpop.f32.mrb[3].mxu1 }
 0x106   : > { %v951_v57 = vpop.f32.mrb[4].mxu1 }
 0x107   : > { %v952_v58 = vadd.f32 %v951_v57, %v878_v55  ;;  %v1835_v59 = vpop.f32.mrb[5].mxu1 }
 0x10a   : > { %v1025_v60 = vpop.f32.mrb[6].mxu1 }
 0x10b   : > { %v1026_v61 = vadd.f32 %v1025_v60, %v952_v58  ;;  %v1840_v62 = vpop.f32.mrb[7].mxu1 }
 0x10e   : > { %v1099_v0 = vpop.f32.mrb[8].mxu1 }
 0x10f   : > { %v1100_v3 = vadd.f32 %v1099_v0, %v1026_v61  ;;  %v1845_v4 = vpop.f32.mrb[9].mxu1 }
 0x112   : > { %v1171_v6 = vpop.f32.mrb[10].mxu1 }
 0x113   : > { %v1172_v7 = vadd.f32 %v1171_v6, %v1100_v3  ;;  %v1850_v8 = vpop.f32.mrb[11].mxu1 }
 0x11f   : > { %v709_v13 = vpop.f32.mrb[0].mxu0 }
 0x120   : > { %v1899_v14 = vadd.f32 %v709_v13, %v231_v12  ;;  %v1820_v15 = vpop.f32.mrb[1].mxu0 }
 0x122   : > { %v1179_v16 = vsel %vm237_vm3, %v1899_v14, 0 }
 0x123   : > { %v1182_v18 = vand.u32 4294901760, %v1179_v16 }
 0x125   : > { %v1259_v19 = vsub.f32 %v1179_v16, %v1182_v18  ;;  %1852 = vmatpush3.msra.mxu1 %v1182_v18 }
 0x126   : > { %1854 = vmatmul.mubr.f32.vlgmr.msra.gmra.mrb[12].mxu1 %v1251_v17  ;;  %1856 = vmatprep.subr.mxu1 %v2021_v1 }
 0x127   : > { %v1260_v20 = vand.u32 4294901760, %v1259_v19  ;;  %1858 = vmatprep.mubr.msk.f32.mxu1 %vm2020_vm0, %v2021_v1 }
 0x129   : > { %1872 = vmatpush3.msra.mxu0 %v1260_v20  ;;  %v1261_v21 = vsub.f32 %v1259_v19, %v1260_v20 }
 0x12a   : > { %1874 = vmatmul.mubr.f32.vlgmr.msra.gmra.mrb[2].mxu0 %v1247_v5 }
 0x12b   : > { %v1262_v22 = vand.u32 4294901760, %v1261_v21 }
 0x12d   : > { %1857 = vmatpush3.msra.mxu1 %v1262_v22 }
 0x12e   : > { %1859 = vmatmul.mubr.f32.vlgmr.msra.gmra.mrb[14].mxu1 %v1247_v5  ;;  %1861 = vmatprep.subr.mxu1 %v2021_v1 }
 0x12f   : > { %1862 = vmatpush3.msra.mxu1 %v1259_v19  ;;  %1863 = vmatprep.mubr.msk.f32.mxu1 %vm2020_vm0, %v2021_v1 }
 0x130   : > { %1866 = vmatprep.subr.mxu1 %v2021_v1 }
 0x132   : > { %1864 = vmatmul.mubr.f32.vlgmr.msra.gmra.mrb[16].mxu1 %v1248_v9 }
 0x133   : > { %1867 = vmatpush3.msra.mxu1 %v1182_v18  ;;  %1868 = vmatprep.mubr.msk.f32.mxu1 %vm2020_vm0, %v2021_v1 }
 0x134   : > { %1876 = vmatprep.subr.mxu1 %v2021_v1 }
 0x136   : > { %1869 = vmatmul.mubr.f32.vlgmr.msra.gmra.mrb[18].mxu1 %v1249_v10 }
 0x137   : > { %1877 = vmatpush3.msra.mxu1 %v1182_v18  ;;  %1878 = vmatprep.mubr.msk.f32.mxu1 %vm2020_vm0, %v2021_v1 }
 0x13a   : > { %1879 = vmatmul.mubr.f32.vlgmr.msra.gmra.mrb[20].mxu1 %v1247_v5 }
 0x1f9   : > { %v1253_v23 = vpop.f32.mrb[12].mxu1 }
 0x1fa   : > { %v1254_v24 = vadd.f32 %v1253_v23, %v1172_v7  ;;  %v1855_v25 = vpop.f32.mrb[13].mxu1 }
 0x1fd   : > { %v1551_v26 = vpop.f32.mrb[2].mxu0 }
 0x1fe   : > { %v1875_v27 = vpop.f32.mrb[3].mxu0 }
 0x201   : > { %v1329_v28 = vpop.f32.mrb[14].mxu1 }
 0x202   : > { %v1330_v29 = vadd.f32 %v1329_v28, %v1254_v24  ;;  %v1860_v30 = vpop.f32.mrb[15].mxu1 }
 0x205   : > { %v1403_v31 = vpop.f32.mrb[16].mxu1 }
 0x206   : > { %v1404_v32 = vadd.f32 %v1403_v31, %v1330_v29  ;;  %v1865_v33 = vpop.f32.mrb[17].mxu1 }
 0x209   : > { %v1477_v34 = vpop.f32.mrb[18].mxu1 }
 0x20a   : > { %v1478_v35 = vadd.f32 %v1477_v34, %v1404_v32  ;;  %v1870_v36 = vpop.f32.mrb[19].mxu1 }
 0x20c   : > { %v1552_v1 = vadd.f32 %v1551_v26, %v1478_v35 }
 0x20d   : > { %v1623_v37 = vpop.f32.mrb[20].mxu1 }
 0x20e   : > { %v1624_v38 = vadd.f32 %v1623_v37, %v1552_v1  ;;  %v1880_v39 = vpop.f32.mrb[21].mxu1 }
 0x210   : > { %v1633_v41 = vadd.f32 %v1631_v40, %v1624_v38 }
 0x212   : > { %1634 = vst [vmem:[%s217_s7] sm:$0xf] %v1633_v41 }
 0x213   : > { %1968 = shalt.err (!%p1965_p3)
}
 0x214   : > { %s1969_s16 = scalar_lea.hbm %s2248_s11, 64  ;;  %s1973_s25 = scalar_lea.hbm %s2295_s5, 128 }
 0x215   : > { %p1970_p4 = scmp.ne.s32.totalorder %s2248_s11, %s1969_s16  ;;  %p1974_p9 = scmp.lt.u32.totalorder %s2248_s11, %s2295_s5 }
 0x216   : > { %p1975_p10 = scmp.lt.u32.totalorder %s1973_s25, %s1969_s16  ;;  %p1977_p12 = scmp.lt.u32.totalorder %s1969_s16, %s2248_s11 }
 0x217   : > { %p1971_p7 = pnand %p1970_p4, %p2092_p5 }
 0x218   : > { %p1976_p11 = por %p1975_p10, %p1974_p9 }
 0x219   : > { %p1972_p8 = pneg %p1971_p7 }
 0x21a   : > { %p1978_p13 = por %p1977_p12, %p1976_p11 }
 0x21c   : > { %p1979_p0 = pnand %p1978_p13, %p1972_p8 }
 0x21e   : > { %1982 = shalt.err (!%p1979_p0)
}
 0x21f   : > { %1911 = dma.vmem_to_hbm [thread:$0]  (%p2092_p5), %s2250_s8, 64, %s2248_s11, %s1636_s12  }
 0x220 PF: > { %p1917_p1 = scmp.ge.s32.totalorder %s2017_s21, 2  ;;  %s1661_s6 = sand.u32 1, %s2005_s18  }
 0x221   : > { %s1662_s7 = scalar_lea.sflag [#allocation3], %s1661_s6 }
 0x222   : > { %p1914_p2 = pnand %p1917_p1, %p2096_p6 }
 0x224   : > { %2000 = dma.done.wait (!%p1914_p2), %s1662_s7, 64  }
 0x225   : > { %2002 = vsyncadd (!%p1914_p2), %s1662_s7, 4294967232  ;;  %p15_p3 = scmp.ge.s32.totalorder %s2079_s24, 4   ;;  %s2298_s18 = smov %s2009_s19 }
 0x226   : > { %s2299_s19 = smov %s2013_s20  ;;  %s2300_s20 = smov %s2090_s27 }
 0x227   : > { %s2301_s21 = smov %s2079_s24  ;;  %17 = sbr.rel (!%p15_p3) target bundleno = 3 (0x3), region = 76 }
 0x22e   :  { %1667 = vsyncpa [#allocation3], 1 }
 0x22f   :  { %1669 = vsyncpa [#allocation3 + $0x1], 1 }

</bundles_post_ra>
